<compile_context>
chip_gen: v7x
topology: tpu7x:2x2x1
jax: 0.10.0
libtpu: 0.0.40
codegen_flags: <defaults>
</compile_context>

<pallas_src>
import functools
import math

import jax
import jax.numpy as jnp
from jax.experimental import pallas as pl
from jax.experimental.pallas import tpu as pltpu


def _round_up(n, m):
    return ((n + m - 1) // m) * m


def _sublane_multiple(dtype):
    # f32 -> 8, bf16 -> 16, int8/fp8 -> 32 (sub-32-bit dtypes pack along sublanes).
    return max(8, 32 // jnp.dtype(dtype).itemsize)


# -----------------------------------------------------------------------------
# One-time parameter preparation (outside the per-call hot path).
# -----------------------------------------------------------------------------
def prepare_params(w1, b1, w2, b2, w3, b3):
    """Pad hidden to a multiple of 128 lanes; biases -> (1, N) f32.

    Done ONCE at parameter-setup time so the jitted forward pass issues no
    padding / cast HBM passes.  The output dimension is NOT padded - the
    kernel stores the true (B, d_out) block.
    """
    d_in, hidden = w1.shape
    d_out = w3.shape[1]
    hidden_p = _round_up(hidden, 128)
    ph = hidden_p - hidden

    w1_p = jnp.pad(w1, ((0, 0), (0, ph)))
    w2_p = jnp.pad(w2, ((0, ph), (0, ph)))
    w3_p = jnp.pad(w3, ((0, ph), (0, 0)))

    b1_p = jnp.pad(b1, (0, ph)).reshape(1, hidden_p).astype(jnp.float32)
    b2_p = jnp.pad(b2, (0, ph)).reshape(1, hidden_p).astype(jnp.float32)
    b3_p = b3.reshape(1, d_out).astype(jnp.float32)

    return w1_p, b1_p, w2_p, b2_p, w3_p, b3_p


# -----------------------------------------------------------------------------
# Kernel
# -----------------------------------------------------------------------------
def _mapping_layer_kernel(x_ref, w1_ref, b1_ref, w2_ref, b2_ref, w3_ref,
                          b3_ref, o_ref, *, use_bf16_matmul):
    """Fused 3-layer MLP: exp(relu(relu(x@W1+b1)@W2+b2)@W3+b3)."""
    x = x_ref[...]
    w1 = w1_ref[...]
    w2 = w2_ref[...]
    w3 = w3_ref[...]
    if use_bf16_matmul:
        # bf16 MXU path (v6e/v7x peak); accumulation stays f32 below.
        x = x.astype(jnp.bfloat16)
        w1 = w1.astype(jnp.bfloat16)
        w2 = w2.astype(jnp.bfloat16)
        w3 = w3.astype(jnp.bfloat16)

    h1 = jnp.dot(x, w1, preferred_element_type=jnp.float32)
    h1 = jnp.maximum(h1 + b1_ref[...], 0.0)          # bias (1,H) broadcasts

    h2 = jnp.dot(h1.astype(w2.dtype), w2, preferred_element_type=jnp.float32)
    h2 = jnp.maximum(h2 + b2_ref[...], 0.0)

    h3 = jnp.dot(h2.astype(w3.dtype), w3, preferred_element_type=jnp.float32)
    h3 = h3 + b3_ref[...]

    o_ref[...] = jnp.exp(h3).astype(o_ref.dtype)


# -----------------------------------------------------------------------------
# Tiling helpers
# -----------------------------------------------------------------------------
def _vmem_bytes(block_b, d_in, hidden_p, d_out, x_isize, w_isize, o_isize):
    """Rough VMEM footprint (counts last dims rounded up to 128-lane tiles)."""
    d_in_v = _round_up(d_in, 128)
    d_out_v = _round_up(d_out, 128)
    weights = (d_in_v * hidden_p + hidden_p * hidden_p
               + hidden_p * d_out_v) * w_isize
    biases = (2 * hidden_p + d_out_v) * 4
    x_tiles = 2 * block_b * d_in_v * x_isize          # double-buffered input tile
    o_tiles = 2 * block_b * d_out_v * o_isize         # double-buffered output tile
    h_tmp = 2 * block_b * hidden_p * 4                # h1/h2 f32 temporaries
    # Weights/biases use constant-index blocks (fetched once) but Pallas still
    # allocates two pipeline buffers each; count both.
    # TODO(synk): single-buffering the weight specs (pipeline_mode=pl.Buffered(1))
    # would halve their resident footprint for hidden >= 1024.
    return 2 * (weights + biases) + x_tiles + o_tiles + h_tmp


def _pick_block_b(B, block_b, sub, vmem_fn, vmem_budget):
    # Keep >= 4 grid steps whenever B allows it (software pipelining + both
    # v7x TensorCores); never collapse to a single giant block.
    target = max(_round_up(pl.cdiv(B, 4), sub), sub)
    bb = max(min(_round_up(block_b, sub), target), sub)
    # Shrink until the estimated VMEM footprint fits the budget.
    while bb > sub and vmem_fn(bb) > vmem_budget:
        bb = max(_round_up(bb // 2, sub), sub)
    return bb


# -----------------------------------------------------------------------------
# Jitted forward pass
# -----------------------------------------------------------------------------
@functools.partial(jax.jit, static_argnames=("block_b", "use_bf16_matmul"))
def mapping_layer(x, w1_p, b1_p, w2_p, b2_p, w3_p, b3_p, *, block_b=1024,
                  use_bf16_matmul=False):
    """Apply MappingLayer. x: (B, input_dim) -> (B, output_dim).

    Weights/biases must come from prepare_params() (hidden padded to 128).
    """
    B, d_in = x.shape
    d_in_w, hidden_p = w1_p.shape
    d_out = w3_p.shape[1]
    assert d_in == d_in_w and hidden_p % 128 == 0, (
        "pass parameters through prepare_params() first")

    out_dtype = x.dtype
    sub = _sublane_multiple(x.dtype)
    x_isize = jnp.dtype(x.dtype).itemsize
    w_isize = jnp.dtype(w1_p.dtype).itemsize
    o_isize = jnp.dtype(out_dtype).itemsize

    vmem_budget = 40 * 1024 * 1024  # v7x-safe (64 MiB physical per TensorCore)
    vmem_fn = lambda bb: _vmem_bytes(bb, d_in, hidden_p, d_out,
                                     x_isize, w_isize, o_isize)
    block_b_eff = _pick_block_b(B, block_b, sub, vmem_fn, vmem_budget)
    grid = (pl.cdiv(B, block_b_eff),)

    footprint = vmem_fn(block_b_eff)
    vmem_limit = int(min(max(footprint * 3 // 2 + (2 << 20), 32 << 20), 64 << 20))

    weight_bytes = ((w1_p.size + w2_p.size + w3_p.size) * w_isize
                    + (b1_p.size + b2_p.size + b3_p.size) * 4)
    cost = pl.CostEstimate(
        flops=2 * B * (d_in * hidden_p + hidden_p * hidden_p + hidden_p * d_out),
        transcendentals=B * d_out,
        bytes_accessed=B * d_in * x_isize + B * d_out * o_isize + weight_bytes,
    )

    kernel = functools.partial(_mapping_layer_kernel,
                               use_bf16_matmul=use_bf16_matmul)

    return pl.pallas_call(
        kernel,
        out_shape=jax.ShapeDtypeStruct((B, d_out), out_dtype),
        grid_spec=pltpu.PrefetchScalarGridSpec(
            num_scalar_prefetch=0,
            grid=grid,
            in_specs=[
                # batch-tiled activations
                pl.BlockSpec((block_b_eff, d_in), lambda i: (i, 0)),
                # weights / biases: constant-index blocks -> fetched once,
                # held resident in VMEM across all grid steps.
                pl.BlockSpec((d_in, hidden_p), lambda i: (0, 0)),
                pl.BlockSpec((1, hidden_p), lambda i: (0, 0)),
                pl.BlockSpec((hidden_p, hidden_p), lambda i: (0, 0)),
                pl.BlockSpec((1, hidden_p), lambda i: (0, 0)),
                pl.BlockSpec((hidden_p, d_out), lambda i: (0, 0)),
                pl.BlockSpec((1, d_out), lambda i: (0, 0)),
            ],
            # Unpadded output block: exactly B*d_out useful bytes go to HBM.
            out_specs=pl.BlockSpec((block_b_eff, d_out), lambda i: (i, 0)),
        ),
        compiler_params=pltpu.CompilerParams(
            dimension_semantics=("parallel",),   # batch shards across TCs (v7x)
            vmem_limit_bytes=vmem_limit),
        cost_estimate=cost,
    )(x, w1_p, b1_p, w2_p, b2_p, w3_p, b3_p)


# -----------------------------------------------------------------------------
# Init / reference / demo
# -----------------------------------------------------------------------------
def init_params(key, input_dim, hidden_dim, output_dim, dtype=jnp.float32):
    """Deterministic init mimicking nn.Linear's U(-1/sqrt(fan_in), 1/sqrt(fan_in))."""
    keys = jax.random.split(key, 6)

    def linear(kw, kb, fan_in, fan_out):
        bound = 1.0 / math.sqrt(fan_in)
        w = jax.random.uniform(kw, (fan_in, fan_out), dtype, -bound, bound)
        b = jax.random.uniform(kb, (fan_out,), dtype, -bound, bound)
        return w, b

    w1, b1 = linear(keys[0], keys[1], input_dim, hidden_dim)
    w2, b2 = linear(keys[2], keys[3], hidden_dim, hidden_dim)
    w3, b3 = linear(keys[4], keys[5], hidden_dim, output_dim)
    return w1, b1, w2, b2, w3, b3


def reference_mlp(x, w1, b1, w2, b2, w3, b3):
    h = jnp.maximum(x @ w1 + b1, 0.0)
    h = jnp.maximum(h @ w2 + b2, 0.0)
    return jnp.exp(h @ w3 + b3)


if __name__ == "__main__":
    key = jax.random.PRNGKey(0)
    k_x, k_p = jax.random.split(key)

    batch, input_dim, hidden_dim, output_dim = 64, 32, 64, 16

    x = jax.random.normal(k_x, (batch, input_dim), jnp.float32)
    raw_params = init_params(k_p, input_dim, hidden_dim, output_dim)

    # One-time parameter preparation (padding / bias layout), outside the
    # per-call hot path.
    params = jax.block_until_ready(prepare_params(*raw_params))

    out = jax.block_until_ready(mapping_layer(x, *params))
    ref = reference_mlp(x, *raw_params)

    assert out.shape == (batch, output_dim)
    assert jnp.allclose(out, ref, atol=1e-5, rtol=1e-5), "mismatch vs reference"

    # Optional bf16-MXU path (v6e/v7x compute-bound lever), accuracy-gated.
    out_bf16 = jax.block_until_ready(mapping_layer(x, *params,
                                                   use_bf16_matmul=True))
    assert jnp.allclose(out_bf16, ref, atol=1e-1, rtol=1e-1), "bf16 path mismatch"

    print("KERNEL_OK")
</pallas_src>

<mosaic_0001>
module attributes {stable_mosaic.version = 11 : i64} {
  func.func @_mapping_layer_kernel(%arg0: i32, %arg1: memref<16x32xf32, #tpu.memory_space<vmem>>, %arg2: memref<32x128xf32, #tpu.memory_space<vmem>>, %arg3: memref<1x128xf32, #tpu.memory_space<vmem>>, %arg4: memref<128x128xf32, #tpu.memory_space<vmem>>, %arg5: memref<1x128xf32, #tpu.memory_space<vmem>>, %arg6: memref<128x16xf32, #tpu.memory_space<vmem>>, %arg7: memref<1x16xf32, #tpu.memory_space<vmem>>, %arg8: memref<16x16xf32, #tpu.memory_space<vmem>>) attributes {dimension_semantics = [#tpu.dimension_semantics<parallel>], iteration_bounds = array<i64: 4>, scalar_prefetch = 0 : i64, scratch_operands = 0 : i64, tpu.core_type = #tpu.core_type<tc>, window_params = [{transform_indices = @transform_0, window_bounds = array<i64: 16, 32>}, {pipeline_mode = #tpu.pipeline_mode<synchronous>, transform_indices = @transform_1, window_bounds = array<i64: 32, 128>}, {pipeline_mode = #tpu.pipeline_mode<synchronous>, transform_indices = @transform_2, window_bounds = array<i64: 1, 128>}, {pipeline_mode = #tpu.pipeline_mode<synchronous>, transform_indices = @transform_3, window_bounds = array<i64: 128, 128>}, {pipeline_mode = #tpu.pipeline_mode<synchronous>, transform_indices = @transform_4, window_bounds = array<i64: 1, 128>}, {pipeline_mode = #tpu.pipeline_mode<synchronous>, transform_indices = @transform_5, window_bounds = array<i64: 128, 16>}, {pipeline_mode = #tpu.pipeline_mode<synchronous>, transform_indices = @transform_6, window_bounds = array<i64: 1, 16>}, {transform_indices = @transform_7, window_bounds = array<i64: 16, 16>}]} {
    %c0 = arith.constant 0 : index
    %c0_0 = arith.constant 0 : index
    %0 = vector.load %arg1[%c0, %c0_0] : memref<16x32xf32, #tpu.memory_space<vmem>>, vector<16x32xf32>
    %c0_1 = arith.constant 0 : index
    %c0_2 = arith.constant 0 : index
    %1 = vector.load %arg2[%c0_1, %c0_2] : memref<32x128xf32, #tpu.memory_space<vmem>>, vector<32x128xf32>
    %c0_3 = arith.constant 0 : index
    %c0_4 = arith.constant 0 : index
    %2 = vector.load %arg4[%c0_3, %c0_4] : memref<128x128xf32, #tpu.memory_space<vmem>>, vector<128x128xf32>
    %c0_5 = arith.constant 0 : index
    %c0_6 = arith.constant 0 : index
    %3 = vector.load %arg6[%c0_5, %c0_6] : memref<128x16xf32, #tpu.memory_space<vmem>>, vector<128x16xf32>
    %cst = arith.constant dense<0.000000e+00> : vector<16x128xf32>
    %4 = tpu.matmul %0, %1, %cst {dimension_numbers = #tpu.dot_dimension_numbers<[1], [0], [0], [1], [0, 0, 1, 1], [], []>} : vector<16x32xf32>, vector<32x128xf32>, vector<16x128xf32> -> vector<16x128xf32>
    %c0_7 = arith.constant 0 : index
    %c0_8 = arith.constant 0 : index
    %5 = vector.load %arg3[%c0_7, %c0_8] : memref<1x128xf32, #tpu.memory_space<vmem>>, vector<1x128xf32>
    %6 = vector.broadcast %5 : vector<1x128xf32> to vector<16x128xf32>
    %7 = arith.addf %4, %6 : vector<16x128xf32>
    %cst_9 = arith.constant 0.000000e+00 : f32
    %8 = vector.broadcast %cst_9 : f32 to vector<16x128xf32>
    %9 = arith.maximumf %7, %8 : vector<16x128xf32>
    %cst_10 = arith.constant dense<0.000000e+00> : vector<16x128xf32>
    %10 = tpu.matmul %9, %2, %cst_10 {dimension_numbers = #tpu.dot_dimension_numbers<[1], [0], [0], [1], [0, 0, 1, 1], [], []>} : vector<16x128xf32>, vector<128x128xf32>, vector<16x128xf32> -> vector<16x128xf32>
    %c0_11 = arith.constant 0 : index
    %c0_12 = arith.constant 0 : index
    %11 = vector.load %arg5[%c0_11, %c0_12] : memref<1x128xf32, #tpu.memory_space<vmem>>, vector<1x128xf32>
    %12 = vector.broadcast %11 : vector<1x128xf32> to vector<16x128xf32>
    %13 = arith.addf %10, %12 : vector<16x128xf32>
    %cst_13 = arith.constant 0.000000e+00 : f32
    %14 = vector.broadcast %cst_13 : f32 to vector<16x128xf32>
    %15 = arith.maximumf %13, %14 : vector<16x128xf32>
    %cst_14 = arith.constant dense<0.000000e+00> : vector<16x16xf32>
    %16 = tpu.matmul %15, %3, %cst_14 {dimension_numbers = #tpu.dot_dimension_numbers<[1], [0], [0], [1], [0, 0, 1, 1], [], []>} : vector<16x128xf32>, vector<128x16xf32>, vector<16x16xf32> -> vector<16x16xf32>
    %c0_15 = arith.constant 0 : index
    %c0_16 = arith.constant 0 : index
    %17 = vector.load %arg7[%c0_15, %c0_16] : memref<1x16xf32, #tpu.memory_space<vmem>>, vector<1x16xf32>
    %18 = vector.broadcast %17 : vector<1x16xf32> to vector<16x16xf32>
    %19 = arith.addf %16, %18 : vector<16x16xf32>
    %20 = math.exp %19 : vector<16x16xf32>
    %c0_17 = arith.constant 0 : index
    %c0_18 = arith.constant 0 : index
    %21 = vector.load %arg8[%c0_17, %c0_18] : memref<16x16xf32, #tpu.memory_space<vmem>>, vector<16x16xf32>
    tpu.vector_store %arg8[%c0_17, %c0_18], %20 {strides = array<i32>} : memref<16x16xf32, #tpu.memory_space<vmem>>, vector<16x16xf32>,
    return
  }
  func.func @transform_0(%arg0: i32) -> (i32, i32) {
    %c0_i32 = arith.constant 0 : i32
    %c0_i32_0 = arith.constant 0 : i32
    return %arg0, %c0_i32 : i32, i32
  }
  func.func @transform_1(%arg0: i32) -> (i32, i32) {
    %c0_i32 = arith.constant 0 : i32
    %c0_i32_0 = arith.constant 0 : i32
    %c0_i32_1 = arith.constant 0 : i32
    return %c0_i32, %c0_i32_0 : i32, i32
  }
  func.func @transform_2(%arg0: i32) -> (i32, i32) {
    %c0_i32 = arith.constant 0 : i32
    %c0_i32_0 = arith.constant 0 : i32
    %c0_i32_1 = arith.constant 0 : i32
    return %c0_i32, %c0_i32_0 : i32, i32
  }
  func.func @transform_3(%arg0: i32) -> (i32, i32) {
    %c0_i32 = arith.constant 0 : i32
    %c0_i32_0 = arith.constant 0 : i32
    %c0_i32_1 = arith.constant 0 : i32
    return %c0_i32, %c0_i32_0 : i32, i32
  }
  func.func @transform_4(%arg0: i32) -> (i32, i32) {
    %c0_i32 = arith.constant 0 : i32
    %c0_i32_0 = arith.constant 0 : i32
    %c0_i32_1 = arith.constant 0 : i32
    return %c0_i32, %c0_i32_0 : i32, i32
  }
  func.func @transform_5(%arg0: i32) -> (i32, i32) {
    %c0_i32 = arith.constant 0 : i32
    %c0_i32_0 = arith.constant 0 : i32
    %c0_i32_1 = arith.constant 0 : i32
    return %c0_i32, %c0_i32_0 : i32, i32
  }
  func.func @transform_6(%arg0: i32) -> (i32, i32) {
    %c0_i32 = arith.constant 0 : i32
    %c0_i32_0 = arith.constant 0 : i32
    %c0_i32_1 = arith.constant 0 : i32
    return %c0_i32, %c0_i32_0 : i32, i32
  }
  func.func @transform_7(%arg0: i32) -> (i32, i32) {
    %c0_i32 = arith.constant 0 : i32
    %c0_i32_0 = arith.constant 0 : i32
    return %arg0, %c0_i32 : i32, i32
  }
}

</mosaic_0001>

<bundles_post_ra>
// kernel: mapping_layer.1
= control target key start
LH: loop header
LB: loop body
LE: loop exit
PB: predicated region body
PF: predicated region fallthrough
CT: control target
= control target key end

     0   :  { %s911_s24 = smov 0   ;;  %s1052_s0 = inlined_call_operand.vmem [shape: f32[64,32], index: 0, kind: input, shape index: {}]   ;;  %s1053_s1 = inlined_call_operand.vmem [shape: f32[32,128], index: 1, kind: input, shape index: {}]   ;;  %s1054_s2 = inlined_call_operand.vmem [shape: f32[1,128], index: 2, kind: input, shape index: {}]   ;;  %s1055_s3 = inlined_call_operand.vmem [shape: f32[128,128], index: 3, kind: input, shape index: {}]   ;;  %s1056_s4 = inlined_call_operand.vmem [shape: f32[1,128], index: 4, kind: input, shape index: {}]   ;;  %s1057_s5 = inlined_call_operand.vmem [shape: f32[128,16], index: 5, kind: input, shape index: {}]   ;;  %s1058_s6 = inlined_call_operand.vmem [shape: f32[1,16], index: 6, kind: input, shape index: {}]   ;;  %s1059_s7 = inlined_call_operand.vmem [shape: f32[64,16], index: 7, kind: output, shape index: {}]  }
   0x1 LB: > { %s640_s25 = sadd.s32 4294967295, %s869_s24   ;;  %p644_p0 = scmp.ge.s32.totalorder %s869_s24, 1  ;;  %s869_s24 = sphi %s911_s24, %s17_s24  }
   0x2   : > { %p238_p1 = scmp.lt.s32.totalorder %s869_s24, 5 }
   0x4   : > { %p239_p2 = pnand %p644_p0, %p238_p1 }
   0x5   : > { %v284_v0 = vld [vmem:[%s1053_s1] sm:$0xff] (!%p239_p2)  ;;  %v285_v1 = vld [vmem:[%s1053_s1 + $0x8] sm:$0xff] (!%p239_p2)  ;;  %v286_v2 = vld [vmem:[%s1053_s1 + $0x10] sm:$0xff] (!%p239_p2)  ;;  %s645_s9 = sshll.u32 (!%p239_p2), %s640_s25, 1  ;;  %vm327_vm0 = vcmask (!%p239_p2), 261120   ;;  %vm581_vm1 = vcmask (!%p239_p2), 130048  }
   0x6   : > { %242 = sbr.rel (%p239_p2) target bundleno = 684 (0x2ac), region = 48  ;;  %v779_v3 = vpack.c.bf16 (!%p239_p2), %v285_v1, %v284_v0  ;;  %v287_v4 = vld [vmem:[%s1053_s1 + $0x18] sm:$0xff] (!%p239_p2)  ;;  %p271_p3 = scmp.lt.s32.totalorder (!%p239_p2), %s645_s9, 7  ;;  %v288_v5 = vld [vmem:[%s1055_s3] sm:$0xff] (!%p239_p2)  ;;  %v289_v6 = vld [vmem:[%s1055_s3 + $0x8] sm:$0xff] (!%p239_p2) }
   0x7   : > { %v783_v7 = vpack.c.bf16 (!%p239_p2), %v287_v4, %v286_v2  ;;  %v787_v8 = vpack.c.bf16 (!%p239_p2), %v289_v6, %v288_v5  ;;  %v290_v9 = vld [vmem:[%s1055_s3 + $0x10] sm:$0xff] (!%p239_p2)  ;;  %v291_v10 = vld [vmem:[%s1055_s3 + $0x18] sm:$0xff] (!%p239_p2)  ;;  %v292_v12 = vld [vmem:[%s1055_s3 + $0x20] sm:$0xff] (!%p239_p2) }
   0x8   : > { %780 = vmatprep.subr.bf16.mxu0 (!%p239_p2), %v779_v3  ;;  %v791_v11 = vpack.c.bf16 (!%p239_p2), %v291_v10, %v290_v9  ;;  %v293_v13 = vld [vmem:[%s1055_s3 + $0x28] sm:$0xff] (!%p239_p2)  ;;  %v294_v16 = vld [vmem:[%s1055_s3 + $0x30] sm:$0xff] (!%p239_p2)  ;;  %v295_v17 = vld [vmem:[%s1055_s3 + $0x38] sm:$0xff] (!%p239_p2) }
   0x9   : > { %782 = vmatpush3.bf16.msra.mxu0 (!%p239_p2), %v779_v3  ;;  %788 = vmatprep.subr.bf16.mxu1 (!%p239_p2), %v787_v8  ;;  %v795_v14 = vpack.c.bf16 (!%p239_p2), %v293_v13, %v292_v12  ;;  %v799_v19 = vpack.c.bf16 (!%p239_p2), %v295_v17, %v294_v16  ;;  %v296_v20 = vld [vmem:[%s1055_s3 + $0x40] sm:$0xff] (!%p239_p2)  ;;  %v297_v21 = vld [vmem:[%s1055_s3 + $0x48] sm:$0xff] (!%p239_p2)  ;;  %v298_v23 = vld [vmem:[%s1055_s3 + $0x50] sm:$0xff] (!%p239_p2) }
   0xa   : > { %784 = vmatprep.subr.bf16.mxu0 (!%p239_p2), %v783_v7  ;;  %790 = vmatpush3.bf16.msra.mxu1 (!%p239_p2), %v787_v8  ;;  %v803_v22 = vpack.c.bf16 (!%p239_p2), %v297_v21, %v296_v20  ;;  %v299_v24 = vld [vmem:[%s1055_s3 + $0x58] sm:$0xff] (!%p239_p2)  ;;  %v300_v26 = vld [vmem:[%s1055_s3 + $0x60] sm:$0xff] (!%p239_p2)  ;;  %v301_v27 = vld [vmem:[%s1055_s3 + $0x68] sm:$0xff] (!%p239_p2) }
   0xb   : > { %792 = vmatprep.subr.bf16.mxu1 (!%p239_p2), %v791_v11  ;;  %v807_v25 = vpack.c.bf16 (!%p239_p2), %v299_v24, %v298_v23  ;;  %v811_v28 = vpack.c.bf16 (!%p239_p2), %v301_v27, %v300_v26  ;;  %v302_v29 = vld [vmem:[%s1055_s3 + $0x70] sm:$0xff] (!%p239_p2)  ;;  %v303_v30 = vld [vmem:[%s1055_s3 + $0x78] sm:$0xff] (!%p239_p2)  ;;  %v304_v32 = vld [vmem:[%s1057_s5] sm:$0xff] (!%p239_p2) }
   0xc   : > { %v815_v31 = vpack.c.bf16 (!%p239_p2), %v303_v30, %v302_v29  ;;  %v305_v33 = vld [vmem:[%s1057_s5 + $0x8] sm:$0xff] (!%p239_p2)  ;;  %v306_v34 = vld [vmem:[%s1057_s5 + $0x10] sm:$0xff] (!%p239_p2)  ;;  %v307_v36 = vld [vmem:[%s1057_s5 + $0x18] sm:$0xff] (!%p239_p2) }
   0xd   : > { %s1061_s9 = smov (!%p271_p3, %s645_s9), 7  ;;  %786 = vmatpush3.bf16.msra.mxu0 %v783_v7  ;;  %v819_v35 = vpack.c.bf16 %v305_v33, %v304_v32  ;;  %v823_v37 = vpack.c.bf16 %v307_v36, %v306_v34  ;;  %v308_v38 = vld [vmem:[%s1057_s5 + $0x20] sm:$0xff]  ;;  %v309_v39 = vld [vmem:[%s1057_s5 + $0x28] sm:$0xff]  ;;  %v310_v41 = vld [vmem:[%s1057_s5 + $0x30] sm:$0xff] }
   0xe   : > { %s646_s25 = sshll.u32 %s1061_s9, 3  ;;  %794 = vmatpush3.bf16.msra.mxu1 %v791_v11  ;;  %v827_v40 = vpack.c.bf16 %v309_v39, %v308_v38  ;;  %v311_v42 = vld [vmem:[%s1057_s5 + $0x38] sm:$0xff]  ;;  %v312_v44 = vld [vmem:[%s1057_s5 + $0x40] sm:$0xff]  ;;  %v313_v45 = vld [vmem:[%s1057_s5 + $0x48] sm:$0xff] }
   0xf   : > { %s274_s28 = scalar_lea.vmem %s1052_s0, %s646_s25  ;;  %796 = vmatprep.subr.bf16.mxu1 %v795_v14  ;;  %820 = vmatprep.subr.bf16.mxu0 %v819_v35  ;;  %v831_v43 = vpack.c.bf16 %v311_v42, %v310_v41  ;;  %v835_v46 = vpack.c.bf16 %v313_v45, %v312_v44  ;;  %v314_v47 = vld [vmem:[%s1057_s5 + $0x50] sm:$0xff]  ;;  %v315_v48 = vld [vmem:[%s1057_s5 + $0x58] sm:$0xff]  ;;  %v316_v50 = vld [vmem:[%s1057_s5 + $0x60] sm:$0xff]  ;;  %s280_s29 = scalar_lea.vmem %s1059_s7, %s646_s25 }
  0x10   : > { %v282_v15 = vld [vmem:[%s274_s28] sm:$0xff]  ;;  %v283_v18 = vld [vmem:[%s274_s28 + $0x8] sm:$0xff]  ;;  %v839_v49 = vpack.c.bf16 %v315_v48, %v314_v47  ;;  %v318_v60 = vld [vmem:[%s1057_s5 + $0x70] sm:$0xff] }
  0x11   : > { %706 = vmatprep.mubr.msk.f32.mxu0 %vm327_vm0, %v282_v15  ;;  %v317_v51 = vld [vmem:[%s1057_s5 + $0x68] sm:$0xff]  ;;  %v649_v53 = vld [vmem:[%s1054_s2] ss:$0 sm:$0xff]  ;;  %v319_v61 = vld [vmem:[%s1057_s5 + $0x78] sm:$0xff] }
  0x12   : > { %707 = vmatmul.mubr.msk.f32.vlgmr.msra.gmra.mrb[0].mxu0 %vm327_vm0, %v283_v18  ;;  %798 = vmatpush3.bf16.msra.mxu1 %v795_v14  ;;  %v843_v52 = vpack.c.bf16 %v317_v51, %v316_v50  ;;  %v847_v62 = vpack.c.bf16 %v319_v61, %v318_v60  ;;  %v652_v63 = vld [vmem:[%s1056_s4] ss:$0 sm:$0xff] }
  0x13   : > { %800 = vmatprep.subr.bf16.mxu1 %v799_v19  ;;  %822 = vmatpush3.bf16.msra.mxu0 %v819_v35  ;;  %v653_v6 = vld [vmem:[%s1058_s6] ss:$0 sm:$0xff] }
  0x14   : > { %824 = vmatprep.subr.bf16.mxu0 %v823_v37 }
  0x16   : > { %802 = vmatpush3.bf16.msra.mxu1 %v799_v19 }
  0x17   : > { %804 = vmatprep.subr.bf16.mxu1 %v803_v22  ;;  %826 = vmatpush3.bf16.msra.mxu0 %v823_v37 }
  0x18   : > { %828 = vmatprep.subr.bf16.mxu0 %v827_v40 }
  0x1a   : > { %806 = vmatpush3.bf16.msra.mxu1 %v803_v22 }
  0x1b   : > { %808 = vmatprep.subr.bf16.mxu1 %v807_v25  ;;  %830 = vmatpush3.bf16.msra.mxu0 %v827_v40 }
  0x1c   : > { %832 = vmatprep.subr.bf16.mxu0 %v831_v43 }
  0x1e   : > { %810 = vmatpush3.bf16.msra.mxu1 %v807_v25 }
  0x1f   : > { %812 = vmatprep.subr.bf16.mxu1 %v811_v28  ;;  %834 = vmatpush3.bf16.msra.mxu0 %v831_v43 }
  0x20   : > { %836 = vmatprep.subr.bf16.mxu0 %v835_v46 }
  0x22   : > { %814 = vmatpush3.bf16.msra.mxu1 %v811_v28 }
  0x23   : > { %816 = vmatprep.subr.bf16.mxu1 %v815_v31  ;;  %838 = vmatpush3.bf16.msra.mxu0 %v835_v46 }
  0x24   : > { %840 = vmatprep.subr.bf16.mxu0 %v839_v49 }
  0x26   : > { %818 = vmatpush3.bf16.msra.mxu1 %v815_v31 }
  0x27   : > { %842 = vmatpush3.bf16.msra.mxu0 %v839_v49 }
  0x28   : > { %844 = vmatprep.subr.bf16.mxu0 %v843_v52 }
  0x2b   : > { %846 = vmatpush3.bf16.msra.mxu0 %v843_v52 }
  0x2c   : > { %848 = vmatprep.subr.bf16.mxu0 %v847_v62 }
  0x2f   : > { %850 = vmatpush3.bf16.msra.mxu0 %v847_v62 }
  0xe5   : > { %v708_v54 = vpop.f32.mrb[0].mxu0 }
  0xe6   : > { %v406_v55 = vadd.f32 %v708_v54, %v649_v53  ;;  %v400_v56 = vpop.f32.mrb[1].mxu0 }
  0xe7   : > { %v401_v57 = vadd.f32 %v649_v53, %v400_v56 }
  0xe8   : > { %v410_v59 = vmax.f32 %v406_v55, 0.0 }
  0xe9   : > { %v409_v58 = vmax.f32 %v401_v57, 0.0 }
  0xeb   : > { %741 = vmatprep.mubr.f32.mxu1 %v409_v58 }
  0xec   : > { %742 = vmatmul.mubr.f32.vlgmr.msra.gmra.mrb[0].mxu1 %v410_v59 }
 0x1bf   : > { %v743_v0 = vpop.f32.mrb[0].mxu1 }
 0x1c0   : > { %v490_v1 = vadd.f32 %v743_v0, %v652_v63  ;;  %v484_v2 = vpop.f32.mrb[1].mxu1 }
 0x1c1   : > { %v485_v3 = vadd.f32 %v652_v63, %v484_v2 }
 0x1c2   : > { %v494_v5 = vmax.f32 %v490_v1, 0.0 }
 0x1c3   : > { %v493_v4 = vmax.f32 %v485_v3, 0.0 }
 0x1c5   : > { %776 = vmatprep.mubr.f32.mxu0 %v493_v4 }
 0x1c6   : > { %777 = vmatmul.mubr.f32.vlgmr.msra.gmra.mrb[2].mxu0 %v494_v5 }
 0x299   : > { %v778_v7 = vpop.f32.mrb[2].mxu0 }
 0x29a   : > { %v574_v8 = vadd.f32 %v778_v7, %v653_v6  ;;  %v568_v9 = vpop.f32.mrb[3].mxu0 }
 0x29b   : > { %v569_v10 = vadd.f32 %v653_v6, %v568_v9 }
 0x29c   : > { %v579_v11 = vmul.f32 1.442695, %v574_v8 }
 0x29d   : > { %v577_v12 = vmul.f32 1.442695, %v569_v10 }
 0x29f   : > { %859 = vpow2.f32 %v577_v12 }
 0x2a0   : > { %861 = vpow2.f32 %v579_v11 }
 0x2a9   : > { %v860_v13 = vpop.eup %859 }
 0x2aa   : > { %v862_v14 = vpop.eup %861  ;;  %582 = vst.msk [vmem:[%s280_s29] sm:$0xff] %vm581_vm1, %v860_v13 }
 0x2ab   : > { %583 = vst.msk [vmem:[%s280_s29 + $0x8] sm:$0xff] %vm581_vm1, %v862_v14 }
 0x2ac PF: > { %s17_s24 = sadd.s32 1, %s869_s24  }
 0x2ad   : > { %p14_p4 = scmp.ge.s32.totalorder %s17_s24, 6  }
 0x2af   :  { %16 = sbr.rel (!%p14_p4) target bundleno = 1 (0x1), region = 78 }

</bundles_post_ra>
